<compile_context>
chip_gen: v7x
topology: tpu7x:2x2x1
jax: 0.10.0
libtpu: 0.0.40
codegen_flags: <defaults>
</compile_context>

<pallas_src>
import jax
import jax.numpy as jnp
from jax import lax
from jax.experimental import pallas as pl
from jax.experimental.pallas import tpu as pltpu


def _round_up(x, m):
    return ((x + m - 1) // m) * m


def _linreg_kernel(x_ref, wt_ref, b_ref, o_ref):
    # x_ref : (BLK, L)   VMEM  -- dense batch tile of X (L == 128 when packed)
    # wt_ref: (P, L)     VMEM  -- block-diagonal packed w^T, resident across grid
    # b_ref : (1,)       SMEM  -- bias scalar
    # o_ref : (P, BLK)   VMEM  -- lane-dense (transposed) output tile
    acc = lax.dot_general(
        wt_ref[...], x_ref[...],
        dimension_numbers=(((1,), (1,)), ((), ())),   # contract over L (lane axis)
        preferred_element_type=jnp.float32,
    )                                                  # -> (P, BLK)
    o_ref[...] = (acc + b_ref[0]).astype(o_ref.dtype)


def linear_regression_forward(X, w, b, *, tmd=8192, xla_fallback_elems=1 << 15):
    """y = X @ w + b.   X: [N, D] f32, w: [D, 1] f32, b: [1] f32 -> [N, 1] f32."""
    N, D = X.shape
    assert w.shape == (D, 1) and b.shape == (1,)

    # Tiny problems: launch/step overhead dominates; let XLA fuse it.
    if N * D <= xla_fallback_elems:
        return X @ w.astype(X.dtype) + b.astype(X.dtype)

    # ---- lane densification: (N, D) -> (M, L) with L = pack*D (128 if possible)
    pack = 128 // D if (0 < D < 128 and 128 % D == 0) else 1
    n_pad = (-N) % pack
    if n_pad:
        # Only hit when N is not a multiple of `pack` (rare for minibatches);
        # pads <= pack-1 zero rows so the free reshape below is valid.
        X = jnp.pad(X, ((0, n_pad), (0, 0)))
    Np = N + n_pad
    M = Np // pack
    L = D * pack
    Xd = X.reshape(M, L)                                  # free row-major bitcast

    # Block-diagonal packed weights: wd_t[p, p*D + d] = w[d]
    wd_t = jnp.kron(jnp.eye(pack, dtype=X.dtype), w.reshape(1, D).astype(X.dtype))
    b_s = b.reshape(1).astype(X.dtype)                    # SMEM scalar

    # ---- tile selection -----------------------------------------------------
    itemsize = X.dtype.itemsize
    l_pad = _round_up(L, 128)                             # VMEM lane-padded row width
    # Keep double-buffered X under ~24 MiB (inside v7x's 32 MiB scoped default).
    max_blk = max(128, ((24 << 20) // (2 * l_pad * itemsize) // 128) * 128)
    blk = min(int(tmd), max_blk)
    # Keep the grid >= ~8 steps when the batch allows it so
    # dimension_semantics=("parallel",) spreads tiles across both v7x cores.
    blk = min(blk, max(128, _round_up(pl.cdiv(M, 8), 128)))
    blk = max(128, (blk // 128) * 128)                    # lane-dense output blocks
    if blk >= M:
        blk = M                                           # single block: exact shape OK
    grid = (pl.cdiv(M, blk),)                             # ragged last block, no pad copy

    x_bytes = blk * l_pad * itemsize
    o_bytes = _round_up(pack, 8) * _round_up(blk, 128) * itemsize
    vmem_limit = int(max(2 * (x_bytes + o_bytes) + (2 << 20), 16 << 20))

    cost = pl.CostEstimate(
        flops=2 * M * L * pack,
        transcendentals=0,
        bytes_accessed=int(Xd.size * itemsize + pack * M * itemsize
                           + wd_t.size * itemsize + itemsize),
    )

    y_t = pl.pallas_call(
        _linreg_kernel,
        out_shape=jax.ShapeDtypeStruct((pack, M), X.dtype),
        grid=grid,
        in_specs=[
            pl.BlockSpec((blk, L), lambda i: (i, 0)),                 # dense X tile
            pl.BlockSpec((pack, L), lambda i: (0, 0)),                # packed w^T (resident)
            pl.BlockSpec(memory_space=pltpu.MemorySpace.SMEM),        # bias scalar
        ],
        out_specs=pl.BlockSpec((pack, blk), lambda i: (0, i)),        # lane-dense store
        compiler_params=pltpu.CompilerParams(
            dimension_semantics=("parallel",),                        # megacore on v7x
            vmem_limit_bytes=vmem_limit,
        ),
        cost_estimate=cost,
    )(Xd, wd_t, b_s)

    # Un-interleave: y_t[p, m] = y[m*pack + p].  Transpose touches only N*4 bytes.
    return y_t.T.reshape(Np, 1)[:N]


if __name__ == "__main__":
    key = jax.random.PRNGKey(0)
    kx, kw, kx2, kx3 = jax.random.split(key, 4)

    num_inputs = 32
    sigma = 0.01

    # Parameters matching LinearRegressionScratch.__init__:
    #   w ~ Normal(0, sigma) with shape (num_inputs, 1); b = zeros(1)
    w = sigma * jax.random.normal(kw, (num_inputs, 1), dtype=jnp.float32)
    b = jnp.zeros((1,), dtype=jnp.float32)

    # Toy module shapes (batch=8, num_inputs=32): force the kernel path so it
    # is exercised even though the XLA fast path would normally handle this.
    X_small = jax.random.normal(kx, (8, num_inputs), dtype=jnp.float32)
    y_small = jax.block_until_ready(
        linear_regression_forward(X_small, w, b, xla_fallback_elems=0))
    assert y_small.shape == (8, 1)
    assert jnp.allclose(y_small, X_small @ w + b, atol=1e-5, rtol=1e-5)

    # Multi-tile check: exercises the batch-tiled grid + ragged last block.
    X_mid = jax.random.normal(kx2, (1000, num_inputs), dtype=jnp.float32)
    y_mid = jax.block_until_ready(
        linear_regression_forward(X_mid, w, b, tmd=128, xla_fallback_elems=0))
    assert y_mid.shape == (1000, 1)
    assert jnp.allclose(y_mid, X_mid @ w + b, atol=1e-5, rtol=1e-5)

    # N not a multiple of the pack factor: exercises the tiny row-pad path.
    X_odd = jax.random.normal(kx3, (301, num_inputs), dtype=jnp.float32)
    y_odd = jax.block_until_ready(
        linear_regression_forward(X_odd, w, b, tmd=128, xla_fallback_elems=0))
    assert y_odd.shape == (301, 1)
    assert jnp.allclose(y_odd, X_odd @ w + b, atol=1e-5, rtol=1e-5)

    print("KERNEL_OK")
</pallas_src>

<mosaic_0001>
module attributes {stable_mosaic.version = 11 : i64} {
  func.func @_linreg_kernel(%arg0: i32, %arg1: memref<2x128xf32, #tpu.memory_space<vmem>>, %arg2: memref<4x128xf32, #tpu.memory_space<vmem>>, %arg3: memref<1xf32, #tpu.memory_space<smem>>, %arg4: memref<4x2xf32, #tpu.memory_space<vmem>>) attributes {dimension_semantics = [#tpu.dimension_semantics<parallel>], iteration_bounds = array<i64: 1>, scalar_prefetch = 0 : i64, scratch_operands = 0 : i64, tpu.core_type = #tpu.core_type<tc>, window_params = [{transform_indices = @transform_0, window_bounds = array<i64: 2, 128>}, {pipeline_mode = #tpu.pipeline_mode<synchronous>, transform_indices = @transform_1, window_bounds = array<i64: 4, 128>}, {transform_indices = @transform_2, window_bounds = array<i64: 1>}, {transform_indices = @transform_3, window_bounds = array<i64: 4, 2>}]} {
    %c0 = arith.constant 0 : index
    %c0_0 = arith.constant 0 : index
    %0 = vector.load %arg2[%c0, %c0_0] : memref<4x128xf32, #tpu.memory_space<vmem>>, vector<4x128xf32>
    %c0_1 = arith.constant 0 : index
    %c0_2 = arith.constant 0 : index
    %1 = vector.load %arg1[%c0_1, %c0_2] : memref<2x128xf32, #tpu.memory_space<vmem>>, vector<2x128xf32>
    %cst = arith.constant dense<0.000000e+00> : vector<4x2xf32>
    %2 = tpu.matmul %0, %1, %cst {dimension_numbers = #tpu.dot_dimension_numbers<[1], [1], [0], [0], [0, 0, 1, 0], [], []>} : vector<4x128xf32>, vector<2x128xf32>, vector<4x2xf32> -> vector<4x2xf32>
    %c0_3 = arith.constant 0 : index
    %3 = memref.load %arg3[%c0_3] : memref<1xf32, #tpu.memory_space<smem>>
    %4 = vector.broadcast %3 : f32 to vector<4x2xf32>
    %5 = arith.addf %2, %4 : vector<4x2xf32>
    %c0_4 = arith.constant 0 : index
    %c0_5 = arith.constant 0 : index
    %6 = vector.load %arg4[%c0_4, %c0_5] : memref<4x2xf32, #tpu.memory_space<vmem>>, vector<4x2xf32>
    tpu.vector_store %arg4[%c0_4, %c0_5], %5 {strides = array<i32>} : memref<4x2xf32, #tpu.memory_space<vmem>>, vector<4x2xf32>,
    return
  }
  func.func @transform_0(%arg0: i32) -> (i32, i32) {
    %c0_i32 = arith.constant 0 : i32
    %c0_i32_0 = arith.constant 0 : i32
    return %arg0, %c0_i32 : i32, i32
  }
  func.func @transform_1(%arg0: i32) -> (i32, i32) {
    %c0_i32 = arith.constant 0 : i32
    %c0_i32_0 = arith.constant 0 : i32
    %c0_i32_1 = arith.constant 0 : i32
    return %c0_i32, %c0_i32_0 : i32, i32
  }
  func.func @transform_2(%arg0: i32) -> i32 {
    %c0_i32 = arith.constant 0 : i32
    %c0_i32_0 = arith.constant 0 : i32
    return %c0_i32 : i32
  }
  func.func @transform_3(%arg0: i32) -> (i32, i32) {
    %c0_i32 = arith.constant 0 : i32
    %c0_i32_0 = arith.constant 0 : i32
    return %c0_i32, %arg0 : i32, i32
  }
}

</mosaic_0001>

<bundles_post_ra>
// kernel: tpu_custom_call.1
= control target key start
LH: loop header
LB: loop body
LE: loop exit
PB: predicated region body
PF: predicated region fallthrough
CT: control target
= control target key end

     0   :  { %v104_v0 = vmov 0.0   ;;  %vm105_vm0 = vmmov 0   ;;  %vm89_vm1 = vcmask 11264   ;;  %s138_s0 = inlined_call_operand.vmem [shape: f32[2,128], index: 0, kind: input, shape index: {}]   ;;  %s139_s1 = inlined_call_operand.vmem [shape: f32[4,128], index: 1, kind: input, shape index: {}]   ;;  %s140_s2 = inlined_call_operand.<no memory space> [shape: f32[1], index: 2, kind: input, shape index: {}]   ;;  %s141_s3 = inlined_call_operand.vmem [shape: f32[4,2], index: 3, kind: output, shape index: {}]  }
   0x1   :  { %97 = vmatprep.subr.mxu0 %v104_v0  ;;  %v16_v1 = vld [vmem:[%s138_s0] sm:$0x3]  ;;  %99 = vmatprep.mubr.msk.f32.mxu0 %vm105_vm0, %v104_v0  ;;  %v18_v3 = vstv %s140_s2 }
   0x2   :  { %98 = vmatpush3.xpose.msra.mxu0 %v16_v1  ;;  %v15_v2 = vld [vmem:[%s139_s1] sm:$0xf] }
   0x5   :  { %100 = vmatmul.mubr.f32.vlgmr.msra.gmra.mrb[0].mxu0 %v15_v2 }
  0xd8   :  { %v85_v4 = vpop.f32.mrb[0].mxu0 }
  0xd9   :  { %v86_v5 = vadd.f32 %v85_v4, %v18_v3  ;;  %v101_v6 = vpop.f32.mrb[1].mxu0 }
  0xdb   :  { %90 = vst.msk [vmem:[%s141_s3] sm:$0xf] %vm89_vm1, %v86_v5 }

</bundles_post_ra>
